<compile_context>
chip_gen: v7x
topology: tpu7x:2x2x1
jax: 0.10.0
libtpu: 0.0.40
codegen_flags: <defaults>
</compile_context>

<pallas_src>
import functools

import jax
import jax.numpy as jnp
from jax import lax
from jax.experimental import pallas as pl
from jax.experimental.pallas import tpu as pltpu


# ----------------------------------------------------------------------------
# Path A: fused grid-less kernel for small shapes (demo scale)
# ----------------------------------------------------------------------------
def hmn_small_kernel(tlen_ref, src_ref, tgt_ref, w1_ref, b1_ref, w2_ref, b2_ref,
                     predict_ref, alpha_ref):
    src = src_ref[...]                                  # (B, S, D) f32 fact segs
    tgt = tgt_ref[...]                                  # (T, D)    f32 law segs (shared)
    B, S, D = src.shape
    T = tgt.shape[0]

    tlen = tlen_ref[...]                                # (B, 1, 1) int32 valid fact segs
    inv_tlen = 1.0 / jnp.maximum(tlen.astype(jnp.float32), 1.0)     # exact divide

    # AoA scores M[b,i,j] = <src[b,i], tgt[j]>  (bf16 MXU, f32 accumulate)
    src_bf = src.astype(jnp.bfloat16).reshape(B * S, D)
    tgt_bf = tgt.astype(jnp.bfloat16)
    M = lax.dot_general(src_bf, tgt_bf, (((1,), (1,)), ((), ())),
                        preferred_element_type=jnp.float32).reshape(B, S, T)

    # Validity mask kept at (B, S, 1) and broadcast over T (perf item 4)
    row_ids = lax.broadcasted_iota(jnp.int32, (B, S, 1), 1)
    valid = row_ids < tlen                              # (B, S, 1) bool

    # alpha: masked softmax over the source-segment axis (axis=1)
    neg = jnp.float32(-1e30)
    xm = jnp.where(valid, M, neg)
    a_max = jnp.max(xm, axis=1, keepdims=True)
    # TODO(synk): if EUP ever saturates at production scale, share one exp pass
    #             between alpha/beta (and consider bf16 exp on v6e/v7x).
    a_exp = jnp.where(valid, jnp.exp(xm - a_max), 0.0)
    a_den = jnp.maximum(jnp.sum(a_exp, axis=1, keepdims=True), jnp.float32(1e-30))
    alpha = a_exp / a_den                               # (B, S, T)

    # beta: softmax over the law-segment axis (axis=2); all law segments valid
    b_max = jnp.max(M, axis=2, keepdims=True)
    b_exp = jnp.exp(M - b_max)
    beta = b_exp / jnp.sum(b_exp, axis=2, keepdims=True)

    inv_T = jnp.float32(1.0 / T)
    inv_S = jnp.float32(1.0 / S)

    avg_alpha = jnp.sum(alpha, axis=2, keepdims=True) * inv_T        # (B, S, 1)
    avg_beta = jnp.sum(jnp.where(valid, beta, 0.0), axis=1) * inv_tlen[:, :, 0]  # (B, T)

    # FactAoA = src + src*avg_alpha ; mean over full S (matches torch.mean(dim=1))
    fact_out = jnp.sum(src * (1.0 + avg_alpha), axis=1) * inv_S      # (B, D)
    tgt_mean = jnp.sum(tgt, axis=0, keepdims=True) * inv_T
    label_out = tgt_mean + jnp.dot(avg_beta.astype(jnp.bfloat16), tgt_bf,
                                   preferred_element_type=jnp.float32) * inv_T

    # final_fc ('deep' 2-layer MLP) on concat(fact, label), concat never built
    w1 = w1_ref[...].astype(jnp.bfloat16)
    h = (jnp.dot(fact_out.astype(jnp.bfloat16), w1[:D],
                 preferred_element_type=jnp.float32)
         + jnp.dot(label_out.astype(jnp.bfloat16), w1[D:],
                   preferred_element_type=jnp.float32)
         + b1_ref[...])
    h = jnp.maximum(h, 0.0)
    logits = jnp.dot(h.astype(jnp.bfloat16), w2_ref[...].astype(jnp.bfloat16),
                     preferred_element_type=jnp.float32) + b2_ref[...]

    m = jnp.max(logits, axis=1, keepdims=True)
    e = jnp.exp(logits - m)
    predict_ref[...] = e / jnp.sum(e, axis=1, keepdims=True)          # (B, n_cls)
    alpha_ref[...] = avg_alpha[:, :, 0]                               # (B, S) lane-dense


def hmn_pallas_small(text_lens, src, tgt, w1, b1, w2, b2):
    B, S, _ = src.shape
    C = w2.shape[1]
    predict, avg_alpha = pl.pallas_call(
        hmn_small_kernel,
        out_shape=(jax.ShapeDtypeStruct((B, C), jnp.float32),
                   jax.ShapeDtypeStruct((B, S), jnp.float32)),
    )(text_lens.reshape(B, 1, 1).astype(jnp.int32), src, tgt, w1, b1, w2, b2)
    return predict, avg_alpha.reshape(B, S, 1)


# ----------------------------------------------------------------------------
# Path B: tiled kernel for production shapes
#   grid = (batch[parallel], pass[arbitrary], S-tiles[arbitrary])
#   pass 0: online column max/denominator for alpha, beta accumulation, src sum
#   pass 1: alpha / avg_alpha output + weighted fact accumulation; finalize FC
# ----------------------------------------------------------------------------
def hmn_tiled_kernel(tlen_ref, src_ref, tgt_ref, w1_ref, b1_ref, w2_ref, b2_ref,
                     predict_ref, alpha_ref,
                     m_sc, l_sc, beta_sc, ssum_sc, fwt_sc, *, s_total):
    b = pl.program_id(0)
    p = pl.program_id(1)
    s = pl.program_id(2)
    ns = pl.num_programs(2)

    st, D = src_ref.shape[1], src_ref.shape[2]
    T = tgt_ref.shape[0]

    tlen = tlen_ref[b]                                   # scalar int32 from SMEM (item 9)
    row = lax.broadcasted_iota(jnp.int32, (st, 1), 0) + s * st
    valid = row < tlen                                   # (st, 1), broadcast over T (item 4)

    src = src_ref[0]                                     # (st, D) f32
    src_bf = src.astype(jnp.bfloat16)
    tgt_bf = tgt_ref[...].astype(jnp.bfloat16)

    # Scores recomputed in both passes (flash-style) instead of storing (S, T).
    M = lax.dot_general(src_bf, tgt_bf, (((1,), (1,)), ((), ())),
                        preferred_element_type=jnp.float32)          # (st, T)

    @pl.when(jnp.logical_and(p == 0, s == 0))
    def _init():
        m_sc[...] = jnp.full(m_sc.shape, -1e30, jnp.float32)
        l_sc[...] = jnp.zeros(l_sc.shape, jnp.float32)
        beta_sc[...] = jnp.zeros(beta_sc.shape, jnp.float32)
        ssum_sc[...] = jnp.zeros(ssum_sc.shape, jnp.float32)
        fwt_sc[...] = jnp.zeros(fwt_sc.shape, jnp.float32)

    @pl.when(p == 0)
    def _pass0():
        neg = jnp.float32(-1e30)
        Mm = jnp.where(valid, M, neg)
        m_new = jnp.maximum(m_sc[...], jnp.max(Mm, axis=0, keepdims=True))   # (1, T)
        e = jnp.where(valid, jnp.exp(Mm - m_new), 0.0)
        l_sc[...] = l_sc[...] * jnp.exp(m_sc[...] - m_new) + jnp.sum(e, axis=0,
                                                                     keepdims=True)
        m_sc[...] = m_new

        # beta: row softmax over T is local to the tile
        b_max = jnp.max(M, axis=1, keepdims=True)
        b_exp = jnp.exp(M - b_max)
        beta = b_exp / jnp.sum(b_exp, axis=1, keepdims=True)
        beta_sc[...] += jnp.sum(jnp.where(valid, beta, 0.0), axis=0, keepdims=True)

        # plain src sum over S (padded rows are zero from the encoder)
        ssum_sc[...] += jnp.sum(src, axis=0, keepdims=True)

    @pl.when(p == 1)
    def _pass1():
        lsafe = jnp.maximum(l_sc[...], jnp.float32(1e-30))
        alpha = jnp.where(valid, jnp.exp(M - m_sc[...]), 0.0) / lsafe        # (st, T)
        avg_alpha = jnp.sum(alpha, axis=1, keepdims=True) * jnp.float32(1.0 / T)
        alpha_ref[...] = avg_alpha.reshape(1, st, 1)
        fwt_sc[...] += jnp.sum(src * avg_alpha, axis=0, keepdims=True)       # (1, D)

    @pl.when(jnp.logical_and(p == 1, s == ns - 1))
    def _finalize():
        inv_S = jnp.float32(1.0 / s_total)
        inv_T = jnp.float32(1.0 / T)
        fact_out = (ssum_sc[...] + fwt_sc[...]) * inv_S                      # (1, D)
        inv_tlen = 1.0 / jnp.maximum(tlen.astype(jnp.float32), 1.0)
        avg_beta = beta_sc[...] * inv_tlen                                   # (1, T)
        tgt = tgt_ref[...]
        tgt_mean = jnp.sum(tgt, axis=0, keepdims=True) * inv_T
        label_out = tgt_mean + jnp.dot(avg_beta.astype(jnp.bfloat16), tgt_bf,
                                       preferred_element_type=jnp.float32) * inv_T
        w1 = w1_ref[...].astype(jnp.bfloat16)
        h = (jnp.dot(fact_out.astype(jnp.bfloat16), w1[:D],
                     preferred_element_type=jnp.float32)
             + jnp.dot(label_out.astype(jnp.bfloat16), w1[D:],
                       preferred_element_type=jnp.float32)
             + b1_ref[...])
        h = jnp.maximum(h, 0.0)
        logits = jnp.dot(h.astype(jnp.bfloat16), w2_ref[...].astype(jnp.bfloat16),
                         preferred_element_type=jnp.float32) + b2_ref[...]
        mx = jnp.max(logits, axis=1, keepdims=True)
        e = jnp.exp(logits - mx)
        probs = e / jnp.sum(e, axis=1, keepdims=True)                        # (1, C)
        predict_ref[...] = probs.reshape(1, 1, probs.shape[1])


def _pick_s_tile(T, D):
    # ~6 (st, T) f32 temporaries + double-buffered src tile must stay well under
    # the v7x budget (64 MiB physical / 32 MiB scoped); items 2 & 10.
    budget = 12 * 1024 * 1024
    for st in (512, 256, 128, 64, 32, 16, 8):
        if 4 * (6 * st * T + 2 * st * D) <= budget:
            return st
    return 8


def hmn_pallas_tiled(text_lens, src, tgt, w1, b1, w2, b2, *, s_tile=None):
    B, S, D = src.shape
    T = tgt.shape[0]
    C = w2.shape[1]
    st = s_tile if s_tile is not None else _pick_s_tile(T, D)

    s_pad = ((S + st - 1) // st) * st
    if s_pad != S:
        src = jnp.pad(src, ((0, 0), (0, s_pad - S), (0, 0)))     # padded rows masked
    ns = s_pad // st

    kernel = functools.partial(hmn_tiled_kernel, s_total=S)

    grid_spec = pltpu.PrefetchScalarGridSpec(
        num_scalar_prefetch=1,                                   # text_lens -> SMEM
        grid=(B, 2, ns),
        in_specs=[
            pl.BlockSpec((1, st, D), lambda b, p, s, tl: (b, s, 0)),
            pl.BlockSpec((T, D), lambda b, p, s, tl: (0, 0)),
            pl.BlockSpec(w1.shape, lambda b, p, s, tl: (0, 0)),
            pl.BlockSpec(b1.shape, lambda b, p, s, tl: (0, 0)),
            pl.BlockSpec(w2.shape, lambda b, p, s, tl: (0, 0)),
            pl.BlockSpec(b2.shape, lambda b, p, s, tl: (0, 0)),
        ],
        out_specs=[
            pl.BlockSpec((1, 1, C), lambda b, p, s, tl: (b, 0, 0)),
            # pass-0 steps park the (unwritten) alpha buffer in a dummy trailing
            # tile, so no output block is ever revisited non-consecutively.
            pl.BlockSpec((1, st, 1),
                         lambda b, p, s, tl: (b, p * s + (1 - p) * ns, 0)),
        ],
        scratch_shapes=[pltpu.VMEM((1, T), jnp.float32),   # running column max
                        pltpu.VMEM((1, T), jnp.float32),   # running column denom
                        pltpu.VMEM((1, T), jnp.float32),   # beta accumulator
                        pltpu.VMEM((1, D), jnp.float32),   # sum of src rows
                        pltpu.VMEM((1, D), jnp.float32)],  # sum of src*avg_alpha
    )

    predict, alpha = pl.pallas_call(
        kernel,
        grid_spec=grid_spec,
        out_shape=(jax.ShapeDtypeStruct((B, 1, C), jnp.float32),
                   jax.ShapeDtypeStruct((B, (ns + 1) * st, 1), jnp.float32)),
        compiler_params=pltpu.CompilerParams(
            dimension_semantics=("parallel", "arbitrary", "arbitrary"),
            vmem_limit_bytes=32 * 1024 * 1024),
    )(text_lens.astype(jnp.int32), src, tgt, w1, b1, w2, b2)

    return predict[:, 0, :], alpha[:, :S, :]


# ----------------------------------------------------------------------------
# Dispatcher (perf item 11: keep both paths)
# ----------------------------------------------------------------------------
_FUSED_SCORE_BYTES_LIMIT = 1 << 20   # full (B,S,T) f32 score tensor <= 1 MiB -> fused


def hmn_pallas(text_lens, text_embedding, law_embedding_2d, w1, b1, w2, b2):
    B, S, _ = text_embedding.shape
    T = law_embedding_2d.shape[0]
    if B * S * T * 4 <= _FUSED_SCORE_BYTES_LIMIT:
        return hmn_pallas_small(text_lens, text_embedding, law_embedding_2d,
                                w1, b1, w2, b2)
    return hmn_pallas_tiled(text_lens, text_embedding, law_embedding_2d,
                            w1, b1, w2, b2)


# ----------------------------------------------------------------------------
# Plain-JAX glue: encoder (embedding gather + segment mean + zero padding)
# ----------------------------------------------------------------------------
def encoder(ids, seg_lens, embs):
    # TODO(synk): at production vocab (339503) fuse this gather+mean into a
    #             Pallas DMA-gather kernel to avoid the (B, max_seg, W, D)
    #             HBM intermediate; negligible at demo scale.
    emb = jnp.take(embs, ids, axis=0)                 # (B, max_seg, W, D)
    seg_emb = jnp.mean(emb, axis=2)                   # (B, max_seg, D)
    max_seg = ids.shape[1]
    mask = (jnp.arange(max_seg)[None, :] < seg_lens[:, None])
    return seg_emb * mask[:, :, None].astype(seg_emb.dtype)


@jax.jit
def hmn_forward(text_ids, text_lens, law_ids, params):
    text_embedding = encoder(text_ids, text_lens, params["embs"])     # (B, S, D)
    law_seg_lens = jnp.full((law_ids.shape[0],), law_ids.shape[1], jnp.int32)
    law_embedding = encoder(law_ids, law_seg_lens, params["embs"])    # (1, T, D)
    predict, avg_alpha = hmn_pallas(
        text_lens, text_embedding, law_embedding[0],
        params["w1"], params["b1"], params["w2"], params["b2"])
    return predict, avg_alpha


# ----------------------------------------------------------------------------
# Pure-JAX reference (mirrors the kernel math, incl. bf16 matmul operands)
# ----------------------------------------------------------------------------
def hmn_reference(text_lens, src, tgt, w1, b1, w2, b2):
    B, S, D = src.shape
    T = tgt.shape[0]
    src_bf = src.astype(jnp.bfloat16)
    tgt_bf = tgt.astype(jnp.bfloat16)
    M = lax.dot_general(src_bf.reshape(B * S, D), tgt_bf, (((1,), (1,)), ((), ())),
                        preferred_element_type=jnp.float32).reshape(B, S, T)
    valid = (jnp.arange(S)[None, :, None] < text_lens[:, None, None])
    xm = jnp.where(valid, M, jnp.float32(-1e30))
    a_max = jnp.max(xm, axis=1, keepdims=True)
    a_exp = jnp.where(valid, jnp.exp(xm - a_max), 0.0)
    alpha = a_exp / jnp.maximum(jnp.sum(a_exp, axis=1, keepdims=True), 1e-30)
    b_max = jnp.max(M, axis=2, keepdims=True)
    b_exp = jnp.exp(M - b_max)
    beta = b_exp / jnp.sum(b_exp, axis=2, keepdims=True)
    avg_alpha = jnp.mean(alpha, axis=2, keepdims=True)                # (B, S, 1)
    inv_tlen = 1.0 / jnp.maximum(text_lens.astype(jnp.float32), 1.0)
    avg_beta = jnp.sum(jnp.where(valid, beta, 0.0), axis=1) * inv_tlen[:, None]
    fact_out = jnp.mean(src * (1.0 + avg_alpha), axis=1)              # (B, D)
    label_out = (jnp.mean(tgt, axis=0, keepdims=True)
                 + jnp.dot(avg_beta.astype(jnp.bfloat16), tgt_bf,
                           preferred_element_type=jnp.float32) / T)
    w1_bf = w1.astype(jnp.bfloat16)
    h = (jnp.dot(fact_out.astype(jnp.bfloat16), w1_bf[:D],
                 preferred_element_type=jnp.float32)
         + jnp.dot(label_out.astype(jnp.bfloat16), w1_bf[D:],
                   preferred_element_type=jnp.float32) + b1)
    h = jnp.maximum(h, 0.0)
    logits = jnp.dot(h.astype(jnp.bfloat16), w2.astype(jnp.bfloat16),
                     preferred_element_type=jnp.float32) + b2
    return jax.nn.softmax(logits, axis=1), avg_alpha


# ----------------------------------------------------------------------------
# Demo
# ----------------------------------------------------------------------------
if __name__ == "__main__":
    # ---------------- demo scale: fused grid-less path ----------------
    VOCAB = 1000          # stands in for 339503
    D = 32                # hidden_dim == embedding_dim (demo)
    B, S, T, W = 2, 8, 8, 4
    N_CLASSES = 6

    key = jax.random.PRNGKey(0)
    k_emb, k_w1, k_b1, k_w2, k_b2, k_txt, k_law = jax.random.split(key, 7)

    params = {
        "embs": jax.random.normal(k_emb, (VOCAB, D), jnp.float32) * 0.02,
        "w1": jax.random.normal(k_w1, (2 * D, 2 * D), jnp.float32) * 0.1,
        "b1": jax.random.normal(k_b1, (1, 2 * D), jnp.float32) * 0.01,
        "w2": jax.random.normal(k_w2, (2 * D, N_CLASSES), jnp.float32) * 0.1,
        "b2": jax.random.normal(k_b2, (1, N_CLASSES), jnp.float32) * 0.01,
    }

    text_ids = jax.random.randint(k_txt, (B, S, W), 0, VOCAB, jnp.int32)
    text_lens = jnp.array([S, 5], jnp.int32)            # valid segments per doc
    law_ids = jax.random.randint(k_law, (1, T, W), 0, VOCAB, jnp.int32)

    predict, avg_alpha = hmn_forward(text_ids, text_lens, law_ids, params)
    predict = jax.block_until_ready(predict)
    avg_alpha = jax.block_until_ready(avg_alpha)

    assert predict.shape == (B, N_CLASSES)
    assert avg_alpha.shape == (B, S, 1)
    assert bool(jnp.all(jnp.isfinite(predict)))
    assert bool(jnp.all(jnp.isfinite(avg_alpha)))
    assert bool(jnp.allclose(jnp.sum(predict, axis=1), 1.0, atol=1e-5))

    text_emb = encoder(text_ids, text_lens, params["embs"])
    law_emb = encoder(law_ids, jnp.full((1,), T, jnp.int32), params["embs"])[0]
    ref_pred, ref_alpha = hmn_reference(text_lens, text_emb, law_emb,
                                        params["w1"], params["b1"],
                                        params["w2"], params["b2"])
    assert bool(jnp.allclose(predict, ref_pred, atol=2e-2))
    assert bool(jnp.allclose(avg_alpha, ref_alpha, atol=2e-2))

    # -------- production-ish scale: tiled online-softmax path --------
    Bp, Sp, Tp, Dp = 4, 400, 256, 128        # D a multiple of 128 (item 7)
    kp = jax.random.split(jax.random.PRNGKey(1), 6)
    tlens_p = jnp.array([400, 1, 57, 200], jnp.int32)
    src_p = jax.random.normal(kp[0], (Bp, Sp, Dp), jnp.float32) * 0.3
    src_p = src_p * (jnp.arange(Sp)[None, :, None] < tlens_p[:, None, None])
    tgt_p = jax.random.normal(kp[1], (Tp, Dp), jnp.float32) * 0.3
    w1_p = jax.random.normal(kp[2], (2 * Dp, 2 * Dp), jnp.float32) * 0.05
    b1_p = jax.random.normal(kp[3], (1, 2 * Dp), jnp.float32) * 0.01
    w2_p = jax.random.normal(kp[4], (2 * Dp, N_CLASSES), jnp.float32) * 0.05
    b2_p = jax.random.normal(kp[5], (1, N_CLASSES), jnp.float32) * 0.01

    # s_tile=128 forces multiple S tiles (ns=4, incl. zero padding 400 -> 512)
    pred_t, alpha_t = hmn_pallas_tiled(tlens_p, src_p, tgt_p,
                                       w1_p, b1_p, w2_p, b2_p, s_tile=128)
    pred_t = jax.block_until_ready(pred_t)
    alpha_t = jax.block_until_ready(alpha_t)

    ref_pred_t, ref_alpha_t = hmn_reference(tlens_p, src_p, tgt_p,
                                            w1_p, b1_p, w2_p, b2_p)
    assert pred_t.shape == (Bp, N_CLASSES)
    assert alpha_t.shape == (Bp, Sp, 1)
    assert bool(jnp.all(jnp.isfinite(pred_t)))
    assert bool(jnp.all(jnp.isfinite(alpha_t)))
    assert bool(jnp.allclose(jnp.sum(pred_t, axis=1), 1.0, atol=1e-5))
    assert bool(jnp.allclose(pred_t, ref_pred_t, atol=1e-2))
    assert bool(jnp.allclose(alpha_t, ref_alpha_t, atol=5e-3))

    print("KERNEL_OK")
</pallas_src>

<mosaic_0001>
module attributes {stable_mosaic.version = 11 : i64} {
  func.func @hmn_small_kernel(%arg0: memref<2x1x1xi32, #tpu.memory_space<vmem>>, %arg1: memref<2x8x32xf32, #tpu.memory_space<vmem>>, %arg2: memref<8x32xf32, #tpu.memory_space<vmem>>, %arg3: memref<64x64xf32, #tpu.memory_space<vmem>>, %arg4: memref<1x64xf32, #tpu.memory_space<vmem>>, %arg5: memref<64x6xf32, #tpu.memory_space<vmem>>, %arg6: memref<1x6xf32, #tpu.memory_space<vmem>>, %arg7: memref<2x6xf32, #tpu.memory_space<vmem>>, %arg8: memref<2x8xf32, #tpu.memory_space<vmem>>) attributes {dimension_semantics = [], scalar_prefetch = 0 : i64, scratch_operands = 0 : i64, tpu.core_type = #tpu.core_type<tc>} {
    %c0 = arith.constant 0 : index
    %c0_0 = arith.constant 0 : index
    %c0_1 = arith.constant 0 : index
    %0 = vector.load %arg1[%c0, %c0_0, %c0_1] : memref<2x8x32xf32, #tpu.memory_space<vmem>>, vector<2x8x32xf32>
    %c0_2 = arith.constant 0 : index
    %c0_3 = arith.constant 0 : index
    %1 = vector.load %arg2[%c0_2, %c0_3] : memref<8x32xf32, #tpu.memory_space<vmem>>, vector<8x32xf32>
    %c0_4 = arith.constant 0 : index
    %c0_5 = arith.constant 0 : index
    %c0_6 = arith.constant 0 : index
    %2 = vector.load %arg0[%c0_4, %c0_5, %c0_6] : memref<2x1x1xi32, #tpu.memory_space<vmem>>, vector<2x1x1xi32>
    %3 = arith.sitofp %2 : vector<2x1x1xi32> to vector<2x1x1xf32>
    %cst = arith.constant 1.000000e+00 : f32
    %4 = vector.broadcast %cst : f32 to vector<2x1x1xf32>
    %5 = arith.maximumf %3, %4 : vector<2x1x1xf32>
    %cst_7 = arith.constant 1.000000e+00 : f32
    %6 = vector.broadcast %cst_7 : f32 to vector<2x1x1xf32>
    %7 = arith.divf %6, %5 : vector<2x1x1xf32>
    %8 = arith.truncf %0 : vector<2x8x32xf32> to vector<2x8x32xbf16>
    %9 = vector.shape_cast %8 : vector<2x8x32xbf16> to vector<16x32xbf16>
    %10 = arith.truncf %1 : vector<8x32xf32> to vector<8x32xbf16>
    %cst_8 = arith.constant dense<0.000000e+00> : vector<16x8xf32>
    %11 = tpu.matmul %9, %10, %cst_8 {dimension_numbers = #tpu.dot_dimension_numbers<[1], [1], [0], [0], [0, 0, 1, 0], [], []>} : vector<16x32xbf16>, vector<8x32xbf16>, vector<16x8xf32> -> vector<16x8xf32>
    %12 = vector.shape_cast %11 : vector<16x8xf32> to vector<2x8x8xf32>
    %13 = tpu.iota {dimensions = array<i32: 1>} : vector<2x8x1xi32>
    %14 = vector.broadcast %2 : vector<2x1x1xi32> to vector<2x8x1xi32>
    %15 = arith.cmpi slt, %13, %14 : vector<2x8x1xi32>
    %cst_9 = arith.constant -1.000000e+30 : f32
    %16 = vector.shape_cast %15 : vector<2x8x1xi1> to vector<2x8x1xi1>
    %17 = vector.broadcast %16 : vector<2x8x1xi1> to vector<2x8x8xi1>
    %18 = vector.broadcast %cst_9 : f32 to vector<2x8x8xf32>
    %19 = arith.select %17, %12, %18 : vector<2x8x8xi1>, vector<2x8x8xf32>
    %cst_10 = arith.constant dense<0xFF800000> : vector<2x8xf32>
    %20 = vector.multi_reduction <maximumf>, %19, %cst_10 [1] : vector<2x8x8xf32> to vector<2x8xf32>
    %21 = vector.shape_cast %20 : vector<2x8xf32> to vector<2x1x8xf32>
    %22 = vector.broadcast %21 : vector<2x1x8xf32> to vector<2x8x8xf32>
    %23 = arith.subf %19, %22 : vector<2x8x8xf32>
    %24 = math.exp %23 : vector<2x8x8xf32>
    %cst_11 = arith.constant 0.000000e+00 : f32
    %25 = vector.shape_cast %15 : vector<2x8x1xi1> to vector<2x8x1xi1>
    %26 = vector.broadcast %25 : vector<2x8x1xi1> to vector<2x8x8xi1>
    %27 = vector.broadcast %cst_11 : f32 to vector<2x8x8xf32>
    %28 = arith.select %26, %24, %27 : vector<2x8x8xi1>, vector<2x8x8xf32>
    %cst_12 = arith.constant dense<0.000000e+00> : vector<2x8xf32>
    %29 = vector.multi_reduction <add>, %28, %cst_12 [1] : vector<2x8x8xf32> to vector<2x8xf32>
    %30 = vector.shape_cast %29 : vector<2x8xf32> to vector<2x1x8xf32>
    %cst_13 = arith.constant 1.000000e-30 : f32
    %31 = vector.broadcast %cst_13 : f32 to vector<2x1x8xf32>
    %32 = arith.maximumf %30, %31 : vector<2x1x8xf32>
    %33 = vector.broadcast %32 : vector<2x1x8xf32> to vector<2x8x8xf32>
    %34 = arith.divf %28, %33 : vector<2x8x8xf32>
    %cst_14 = arith.constant dense<0xFF800000> : vector<2x8xf32>
    %35 = vector.multi_reduction <maximumf>, %12, %cst_14 [2] : vector<2x8x8xf32> to vector<2x8xf32>
    %36 = vector.shape_cast %35 : vector<2x8xf32> to vector<2x8x1xf32>
    %37 = vector.broadcast %36 : vector<2x8x1xf32> to vector<2x8x8xf32>
    %38 = arith.subf %12, %37 : vector<2x8x8xf32>
    %39 = math.exp %38 : vector<2x8x8xf32>
    %cst_15 = arith.constant dense<0.000000e+00> : vector<2x8xf32>
    %40 = vector.multi_reduction <add>, %39, %cst_15 [2] : vector<2x8x8xf32> to vector<2x8xf32>
    %41 = vector.shape_cast %40 : vector<2x8xf32> to vector<2x8x1xf32>
    %42 = vector.broadcast %41 : vector<2x8x1xf32> to vector<2x8x8xf32>
    %43 = arith.divf %39, %42 : vector<2x8x8xf32>
    %cst_16 = arith.constant dense<0.000000e+00> : vector<2x8xf32>
    %44 = vector.multi_reduction <add>, %34, %cst_16 [2] : vector<2x8x8xf32> to vector<2x8xf32>
    %45 = vector.shape_cast %44 : vector<2x8xf32> to vector<2x8x1xf32>
    %cst_17 = arith.constant 1.250000e-01 : f32
    %46 = vector.broadcast %cst_17 : f32 to vector<2x8x1xf32>
    %47 = arith.mulf %45, %46 : vector<2x8x1xf32>
    %cst_18 = arith.constant 0.000000e+00 : f32
    %48 = vector.shape_cast %15 : vector<2x8x1xi1> to vector<2x8x1xi1>
    %49 = vector.broadcast %48 : vector<2x8x1xi1> to vector<2x8x8xi1>
    %50 = vector.broadcast %cst_18 : f32 to vector<2x8x8xf32>
    %51 = arith.select %49, %43, %50 : vector<2x8x8xi1>, vector<2x8x8xf32>
    %cst_19 = arith.constant dense<0.000000e+00> : vector<2x8xf32>
    %52 = vector.multi_reduction <add>, %51, %cst_19 [1] : vector<2x8x8xf32> to vector<2x8xf32>
    %53 = vector.shape_cast %7 : vector<2x1x1xf32> to vector<2x1xf32>
    %54 = vector.broadcast %53 : vector<2x1xf32> to vector<2x8xf32>
    %55 = arith.mulf %52, %54 : vector<2x8xf32>
    %cst_20 = arith.constant 1.000000e+00 : f32
    %56 = vector.broadcast %cst_20 : f32 to vector<2x8x1xf32>
    %57 = arith.addf %56, %47 : vector<2x8x1xf32>
    %58 = vector.broadcast %57 : vector<2x8x1xf32> to vector<2x8x32xf32>
    %59 = arith.mulf %0, %58 : vector<2x8x32xf32>
    %cst_21 = arith.constant dense<0.000000e+00> : vector<2x32xf32>
    %60 = vector.multi_reduction <add>, %59, %cst_21 [1] : vector<2x8x32xf32> to vector<2x32xf32>
    %cst_22 = arith.constant 1.250000e-01 : f32
    %61 = vector.broadcast %cst_22 : f32 to vector<2x32xf32>
    %62 = arith.mulf %60, %61 : vector<2x32xf32>
    %cst_23 = arith.constant dense<0.000000e+00> : vector<32xf32>
    %63 = vector.multi_reduction <add>, %1, %cst_23 [0] : vector<8x32xf32> to vector<32xf32>
    %64 = vector.shape_cast %63 : vector<32xf32> to vector<1x32xf32>
    %cst_24 = arith.constant 1.250000e-01 : f32
    %65 = vector.broadcast %cst_24 : f32 to vector<1x32xf32>
    %66 = arith.mulf %64, %65 : vector<1x32xf32>
    %67 = arith.truncf %55 : vector<2x8xf32> to vector<2x8xbf16>
    %cst_25 = arith.constant dense<0.000000e+00> : vector<2x32xf32>
    %68 = tpu.matmul %67, %10, %cst_25 {dimension_numbers = #tpu.dot_dimension_numbers<[1], [0], [0], [1], [0, 0, 1, 1], [], []>} : vector<2x8xbf16>, vector<8x32xbf16>, vector<2x32xf32> -> vector<2x32xf32>
    %cst_26 = arith.constant 1.250000e-01 : f32
    %69 = vector.broadcast %cst_26 : f32 to vector<2x32xf32>
    %70 = arith.mulf %68, %69 : vector<2x32xf32>
    %71 = vector.broadcast %66 : vector<1x32xf32> to vector<2x32xf32>
    %72 = arith.addf %71, %70 : vector<2x32xf32>
    %c0_27 = arith.constant 0 : index
    %c0_28 = arith.constant 0 : index
    %73 = vector.load %arg3[%c0_27, %c0_28] : memref<64x64xf32, #tpu.memory_space<vmem>>, vector<64x64xf32>
    %74 = arith.truncf %73 : vector<64x64xf32> to vector<64x64xbf16>
    %75 = arith.truncf %62 : vector<2x32xf32> to vector<2x32xbf16>
    %76 = vector.extract_strided_slice %74 {offsets = [0, 0], sizes = [32, 64], strides = [1, 1]} : vector<64x64xbf16> to vector<32x64xbf16>
    %cst_29 = arith.constant dense<0.000000e+00> : vector<2x64xf32>
    %77 = tpu.matmul %75, %76, %cst_29 {dimension_numbers = #tpu.dot_dimension_numbers<[1], [0], [0], [1], [0, 0, 1, 1], [], []>} : vector<2x32xbf16>, vector<32x64xbf16>, vector<2x64xf32> -> vector<2x64xf32>
    %78 = arith.truncf %72 : vector<2x32xf32> to vector<2x32xbf16>
    %79 = vector.extract_strided_slice %74 {offsets = [32, 0], sizes = [32, 64], strides = [1, 1]} : vector<64x64xbf16> to vector<32x64xbf16>
    %cst_30 = arith.constant dense<0.000000e+00> : vector<2x64xf32>
    %80 = tpu.matmul %78, %79, %cst_30 {dimension_numbers = #tpu.dot_dimension_numbers<[1], [0], [0], [1], [0, 0, 1, 1], [], []>} : vector<2x32xbf16>, vector<32x64xbf16>, vector<2x64xf32> -> vector<2x64xf32>
    %81 = arith.addf %77, %80 : vector<2x64xf32>
    %c0_31 = arith.constant 0 : index
    %c0_32 = arith.constant 0 : index
    %82 = vector.load %arg4[%c0_31, %c0_32] : memref<1x64xf32, #tpu.memory_space<vmem>>, vector<1x64xf32>
    %83 = vector.broadcast %82 : vector<1x64xf32> to vector<2x64xf32>
    %84 = arith.addf %81, %83 : vector<2x64xf32>
    %cst_33 = arith.constant 0.000000e+00 : f32
    %85 = vector.broadcast %cst_33 : f32 to vector<2x64xf32>
    %86 = arith.maximumf %84, %85 : vector<2x64xf32>
    %87 = arith.truncf %86 : vector<2x64xf32> to vector<2x64xbf16>
    %c0_34 = arith.constant 0 : index
    %c0_35 = arith.constant 0 : index
    %88 = vector.load %arg5[%c0_34, %c0_35] : memref<64x6xf32, #tpu.memory_space<vmem>>, vector<64x6xf32>
    %89 = arith.truncf %88 : vector<64x6xf32> to vector<64x6xbf16>
    %cst_36 = arith.constant dense<0.000000e+00> : vector<2x6xf32>
    %90 = tpu.matmul %87, %89, %cst_36 {dimension_numbers = #tpu.dot_dimension_numbers<[1], [0], [0], [1], [0, 0, 1, 1], [], []>} : vector<2x64xbf16>, vector<64x6xbf16>, vector<2x6xf32> -> vector<2x6xf32>
    %c0_37 = arith.constant 0 : index
    %c0_38 = arith.constant 0 : index
    %91 = vector.load %arg6[%c0_37, %c0_38] : memref<1x6xf32, #tpu.memory_space<vmem>>, vector<1x6xf32>
    %92 = vector.broadcast %91 : vector<1x6xf32> to vector<2x6xf32>
    %93 = arith.addf %90, %92 : vector<2x6xf32>
    %cst_39 = arith.constant dense<0xFF800000> : vector<2xf32>
    %94 = vector.multi_reduction <maximumf>, %93, %cst_39 [1] : vector<2x6xf32> to vector<2xf32>
    %95 = vector.shape_cast %94 : vector<2xf32> to vector<2x1xf32>
    %96 = vector.broadcast %95 : vector<2x1xf32> to vector<2x6xf32>
    %97 = arith.subf %93, %96 : vector<2x6xf32>
    %98 = math.exp %97 : vector<2x6xf32>
    %cst_40 = arith.constant dense<0.000000e+00> : vector<2xf32>
    %99 = vector.multi_reduction <add>, %98, %cst_40 [1] : vector<2x6xf32> to vector<2xf32>
    %100 = vector.shape_cast %99 : vector<2xf32> to vector<2x1xf32>
    %101 = vector.broadcast %100 : vector<2x1xf32> to vector<2x6xf32>
    %102 = arith.divf %98, %101 : vector<2x6xf32>
    %c0_41 = arith.constant 0 : index
    %c0_42 = arith.constant 0 : index
    %103 = vector.load %arg7[%c0_41, %c0_42] : memref<2x6xf32, #tpu.memory_space<vmem>>, vector<2x6xf32>
    tpu.vector_store %arg7[%c0_41, %c0_42], %102 {strides = array<i32>} : memref<2x6xf32, #tpu.memory_space<vmem>>, vector<2x6xf32>,
    %104 = vector.shape_cast %47 : vector<2x8x1xf32> to vector<2x8xf32>
    %c0_43 = arith.constant 0 : index
    %c0_44 = arith.constant 0 : index
    %105 = vector.load %arg8[%c0_43, %c0_44] : memref<2x8xf32, #tpu.memory_space<vmem>>, vector<2x8xf32>
    tpu.vector_store %arg8[%c0_43, %c0_44], %104 {strides = array<i32>} : memref<2x8xf32, #tpu.memory_space<vmem>>, vector<2x8xf32>,
    return
  }
}

</mosaic_0001>

<bundles_post_ra>
// kernel: hmn_forward.1
= control target key start
LH: loop header
LB: loop body
LE: loop exit
PB: predicated region body
PF: predicated region fallthrough
CT: control target
= control target key end

     0   :  { %14 = vsyncpa [#allocation3], 0  ;;  %vm52_vm0 = vcmask 261120   ;;  %v100_v1 = vlaneseq  ;;  %v699_v2 = vmov 0.0   ;;  %vm700_vm1 = vmmov 0   ;;  %s941_s0 = inlined_call_operand.vmem [shape: s32[2,1,1], index: 0, kind: input, shape index: {}]   ;;  %s942_s1 = inlined_call_operand.vmem [shape: f32[2,8,32], index: 1, kind: input, shape index: {}]   ;;  %s943_s2 = inlined_call_operand.vmem [shape: f32[8,32], index: 2, kind: input, shape index: {}]   ;;  %s944_s3 = inlined_call_operand.vmem [shape: f32[64,64], index: 3, kind: input, shape index: {}]   ;;  %s945_s4 = inlined_call_operand.vmem [shape: f32[1,64], index: 4, kind: input, shape index: {}]   ;;  %s946_s5 = inlined_call_operand.vmem [shape: f32[64,6], index: 5, kind: input, shape index: {}]   ;;  %s947_s6 = inlined_call_operand.vmem [shape: f32[1,6], index: 6, kind: input, shape index: {}]   ;;  %s948_s7 = inlined_call_operand.hbm [shape: f32[2,6], index: 7, kind: output, shape index: {0}]   ;;  %s949_s8 = inlined_call_operand.hbm [shape: f32[2,8], index: 8, kind: output, shape index: {1}]  }
   0x1   :  { %v752_v0 = vld [vmem:[%s943_s2] sm:$0xff]  ;;  %580 = vmatprep.subr.bf16.mxu0 %v699_v2  ;;  %582 = vmatprep.mubr.msk.bf16.mxu0 %vm700_vm1, %v699_v2 }
   0x2   :  { %v757_v3 = vpack.c.bf16 %v752_v0, %v752_v0 }
   0x3   :  { %15 = vsyncpa [#allocation5], 0  ;;  %v701_v4 = vmov 0   ;;  %v762_v5 = vshrl.u32 %v100_v1, 7  ;;  %v769_v7 = vld [vmem:[%s941_s0] sm:$0x1]  ;;  %592 = vmatprep.subr.bf16.mxu1 %v699_v2  ;;  %596 = vmatprep.mubr.msk.bf16.mxu1 %vm700_vm1, %v699_v2 }
   0x4   :  { %626 = vset.pattern.permute.xlu1 %v701_v4  ;;  %625 = vset.pattern.permute.xlu0 %v701_v4  ;;  %v57_v6 = vsel %vm52_vm0, %v757_v3, 0  ;;  %v777_v8 = vld [vmem:[%s942_s1] sm:$0xff]  ;;  %v782_v9 = vld [vmem:[%s942_s1 + $0x8] sm:$0xff]  ;;  %vm124_vm3 = vcmask 64512   ;;  %v36_v52 = vcvt.s32.f32 %v769_v7  ;;  %vm274_vm7 = vcmask 1043456  }
   0x5   :  { %581 = vmatpush3.bf16.xpose.msra.mxu0 %v57_v6  ;;  %v785_v10 = vsub.s32 0, %v762_v5  ;;  %v564_v12 = vpack.c.bf16 %v782_v9, %v777_v8  ;;  %v35_v14 = vld [vmem:[%s941_s0 + $0x1] sm:$0x1]  ;;  %vm268_vm8 = vcmask 1041409   ;;  %vm526_vm9 = vcmask 58368  }
   0x6   :  { %586 = vmatprep.subr.bf16.mxu0 %v699_v2  ;;  %v37_v15 = vcvt.s32.f32 %v35_v14  ;;  %v38_v57 = vmax.f32 %v36_v52, 1.0  ;;  %vm455_vm10 = vcmask 523264   ;;  %vm499_vm11 = vcmask 41984  }
   0x7   :  { %v105_v11 = vrot.slane %v769_v7, %v785_v10  ;;  %v109_v24 = vrot.slane %v35_v14, %v785_v10 }
   0x8   :  { %v39_v16 = vmax.f32 %v37_v15, 1.0 }
   0x9   :  { %vm110_vm2 = vcmp.lt.s32.totalorder %v762_v5, %v105_v11  ;;  %vm111_vm4 = vcmp.lt.s32.totalorder %v762_v5, %v109_v24 }
   0xa   :  { %v112_v13 = vsel %vm110_vm2, 1, %v701_v4  ;;  %627 = vrcp.f32 %v39_v16  ;;  %v113_v25 = vsel %vm111_vm4, 1, %v701_v4 }
   0xb   :  { %115 = vperm.xlu1 %626, %v112_v13  }
   0xc   :  { %583 = vmatmul.mubr.msk.bf16.vlgmr.msra.gmra.mrb[0].mxu0 %vm52_vm0, %v564_v12 }
   0xd   :  { %588 = vmatprep.mubr.msk.bf16.mxu0 %vm700_vm1, %v699_v2 }
  0x14   :  { %v628_v17 = vpop.eup %627 }
  0x15   :  { %224 = vperm.xlu1 %626, %v628_v17  }
  0x8a   :  { %v803_v26 = vpop.permute.xlu1 %115 }
  0x8b   :  { %vm120_vm5 = vcmp.eq.s32.totalorder %v803_v26, 1 }
  0xdf   :  { %v93_v18 = vpop.f32.mrb[0].mxu0 }
  0xe0   :  { %v584_v19 = vpop.f32.mrb[1].mxu0  ;;  %v167_v23 = vsel %vm124_vm3, %v93_v18, -inf  ;;  %v122_v27 = vsel %vm120_vm5, %v93_v18, -1e+30 }
  0xe1   :  { %v96_v20 = vpop.f32.mrb[2].mxu0  ;;  %v125_v28 = vsel %vm124_vm3, %v122_v27, -inf }
  0xe2   :  { %v585_v21 = vpop.f32.mrb[3].mxu0  ;;  %v170_v22 = vsel %vm124_vm3, %v96_v20, -inf  ;;  %v126_v29 = vrot.slane %v125_v28, 4 }
  0xe3   :  { %171 = vmax.xlane.f32.xlu0 %v170_v22 }
  0xe4   :  { %v127_v30 = vmax.f32 %v125_v28, %v126_v29 }
  0xe6   :  { %v128_v31 = vrot.slane %v127_v30, 2 }
  0xe7   :  { %168 = vmax.xlane.f32.xlu0 %v167_v23 }
  0xe8   :  { %v129_v32 = vmax.f32 %v127_v30, %v128_v31  ;;  %v275_v31 = vsel %vm274_vm7, %v757_v3, 0 }
  0xe9   :  { %587 = vmatpush3.bf16.msra.mxu0 %v275_v31 }
  0xea   :  { %v130_v33 = vrot.slane %v129_v32, 1  ;;  %600 = vmatprep.subr.bf16.mxu0 %v699_v2 }
  0xec   :  { %v131_v35 = vmax.f32 %v129_v32, %v130_v33  ;;  %v225_v33 = vpop.permute.xlu1 %224 }
  0xee   :  { %v139_v38 = vsub.f32 %v122_v27, %v131_v35 }
  0xf0   :  { %v141_v42 = vmul.f32 1.442695, %v139_v38 }
  0xfd   :  { %118 = vperm.xlu0 %625, %v113_v25  }
 0x170   :  { %v172_v34 = vpop.xlane.xlu0 %171 }
 0x171   :  { %v174_v36 = vsub.f32 %v96_v20, %v172_v34 }
 0x173   :  { %v177_v40 = vmul.f32 1.442695, %v174_v36 }
 0x174   :  { %v169_v37 = vpop.xlane.xlu0 %168 }
 0x175   :  { %v173_v39 = vsub.f32 %v93_v18, %v169_v37 }
 0x177   :  { %v175_v41 = vmul.f32 1.442695, %v173_v39 }
 0x179   :  { %629 = vpow2.f32 %v175_v41 }
 0x17a   :  { %631 = vpow2.f32 %v177_v40 }
 0x17b   :  { %633 = vpow2.f32 %v141_v42 }
 0x17c   :  { %v809_v43 = vpop.permute.xlu0 %118  ;;  %635 = vrcp.f32 %v38_v57 }
 0x17d   :  { %vm121_vm6 = vcmp.eq.s32.totalorder %v809_v43, 1 }
 0x17e   :  { %v123_v44 = vsel %vm121_vm6, %v96_v20, -1e+30 }
 0x17f   :  { %v132_v45 = vsel %vm124_vm3, %v123_v44, -inf }
 0x180   :  { %v133_v46 = vrot.slane %v132_v45, 4 }
 0x182   :  { %v134_v47 = vmax.f32 %v132_v45, %v133_v46 }
 0x183   :  { %v630_v48 = vpop.eup %629 }
 0x184   :  { %v135_v49 = vrot.slane %v134_v47, 2  ;;  %v179_v50 = vsel %vm124_vm3, %v630_v48, 0.0  ;;  %v632_v51 = vpop.eup %631 }
 0x185   :  { %180 = vadd.xlane.f32.xlu1 %v179_v50  ;;  %v634_v54 = vpop.eup %633  ;;  %v182_v56 = vsel %vm124_vm3, %v632_v51, 0.0 }
 0x186   :  { %v136_v53 = vmax.f32 %v134_v47, %v135_v49  ;;  %v145_v59 = vsel %vm120_vm5, %v634_v54, 0.0  ;;  %v636_v6 = vpop.eup %635 }
 0x187   :  { %v147_v61 = vsel %vm124_vm3, %v145_v59, 0.0 }
 0x188   :  { %v137_v55 = vrot.slane %v136_v53, 1  ;;  %v148_v63 = vrot.slane %v147_v61, 4 }
 0x189   :  { %183 = vadd.xlane.f32.xlu1 %v182_v56 }
 0x18a   :  { %v138_v58 = vmax.f32 %v136_v53, %v137_v55  ;;  %v149_v4 = vadd.f32 %v148_v63, %v147_v61  ;;  %v320_v63 = vld [vmem:[%s944_s3 + $0x8] sm:$0xff] }
 0x18c   :  { %v140_v60 = vsub.f32 %v123_v44, %v138_v58  ;;  %v150_v7 = vrot.slane %v149_v4, 2 }
 0x18e   :  { %v143_v62 = vmul.f32 1.442695, %v140_v60  ;;  %v151_v14 = vadd.f32 %v150_v7, %v149_v4 }
 0x190   :  { %637 = vpow2.f32 %v143_v62  ;;  %v152_v17 = vrot.slane %v151_v14, 1  ;;  %v319_v62 = vld [vmem:[%s944_s3] sm:$0xff] }
 0x192   :  { %v153_v20 = vadd.f32 %v152_v17, %v151_v14 }
 0x194   :  { %v161_v23 = vmax.f32 %v153_v20, 1e-30 }
 0x19a   :  { %v638_v11 = vpop.eup %637  ;;  %215 = vperm.xlu1 %626, %v636_v6  }
 0x19b   :  { %v146_v12 = vsel %vm121_vm6, %v638_v11, 0.0 }
 0x19c   :  { %v154_v13 = vsel %vm124_vm3, %v146_v12, 0.0 }
 0x19d   :  { %v155_v15 = vrot.slane %v154_v13, 4 }
 0x19f   :  { %v156_v16 = vadd.f32 %v155_v15, %v154_v13  ;;  %v322_v13 = vld [vmem:[%s944_s3 + $0x18] sm:$0xff]  ;;  %v515_v15 = vand.u32 127, %v100_v1 }
 0x1a1   :  { %v157_v18 = vrot.slane %v156_v16, 2 }
 0x1a3   :  { %v158_v19 = vadd.f32 %v157_v18, %v156_v16 }
 0x1a5   :  { %v159_v21 = vrot.slane %v158_v19, 1 }
 0x1a7   :  { %v160_v22 = vadd.f32 %v159_v21, %v158_v19  ;;  %v518_v19 = vsub.s32 %v515_v15, %v762_v5 }
 0x1a9   :  { %v162_v24 = vmax.f32 %v160_v22, 1e-30 }
 0x1ab   :  { %639 = vrcp.f32 %v162_v24 }
 0x1ac   :  { %641 = vrcp.f32 %v161_v23 }
 0x1b5   :  { %v640_v25 = vpop.eup %639 }
 0x1b6   :  { %v642_v27 = vpop.eup %641  ;;  %v166_v28 = vmul.f32 %v640_v25, %v146_v12  ;;  %v321_v12 = vld [vmem:[%s944_s3 + $0x10] sm:$0xff] }
 0x1b7   :  { %v164_v30 = vmul.f32 %v642_v27, %v145_v59  ;;  %v328_v14 = vpack.c.bf16 %v322_v13, %v321_v12  ;;  %v439_v12 = vld [vmem:[%s946_s5 + $0x18] sm:$0xff] }
 0x1b8   :  { %v192_v29 = vsel %vm124_vm3, %v166_v28, 0.0 }
 0x1b9   :  { %193 = vadd.xlane.f32.xlu0 %v192_v29  ;;  %v189_v32 = vsel %vm124_vm3, %v164_v30, 0.0 }
 0x1be   :  { %190 = vadd.xlane.f32.xlu1 %v189_v32 }
 0x212   :  { %v181_v34 = vpop.xlane.xlu1 %180 }
 0x213   :  { %643 = vrcp.f32 %v181_v34 }
 0x216   :  { %v184_v35 = vpop.xlane.xlu1 %183 }
 0x217   :  { %645 = vrcp.f32 %v184_v35 }
 0x21a   :  { %v216_v53 = vpop.permute.xlu1 %215 }
 0x21b   :  { %v221_v56 = vrot.slane %v216_v53, %v785_v10 }
 0x21d   :  { %v644_v36 = vpop.eup %643 }
 0x21e   :  { %v186_v37 = vmul.f32 %v644_v36, %v630_v48 }
 0x220   :  { %v197_v38 = vsel %vm120_vm5, %v186_v37, 0.0 }
 0x221   :  { %v646_v39 = vpop.eup %645  ;;  %v199_v40 = vsel %vm124_vm3, %v197_v38, 0.0 }
 0x222   :  { %v188_v3 = vmul.f32 %v646_v39, %v632_v51  ;;  %v200_v41 = vrot.slane %v199_v40, 4  ;;  %v230_v51 = vrot.slane %v225_v33, %v785_v10  ;;  %v327_v10 = vpack.c.bf16 %v320_v63, %v319_v62  ;;  %v436_v62 = vld [vmem:[%s946_s5] sm:$0xff]  ;;  %v437_v63 = vld [vmem:[%s946_s5 + $0x8] sm:$0xff] }
 0x224   :  { %v198_v42 = vsel %vm121_vm6, %v188_v3, 0.0  ;;  %v201_v44 = vadd.f32 %v200_v41, %v199_v40 }
 0x225   :  { %v206_v45 = vsel %vm124_vm3, %v198_v42, 0.0 }
 0x226   :  { %v207_v46 = vrot.slane %v206_v45, 4  ;;  %v202_v47 = vrot.slane %v201_v44, 2 }
 0x228   :  { %v208_v49 = vadd.f32 %v207_v46, %v206_v45  ;;  %v203_v50 = vadd.f32 %v202_v47, %v201_v44  ;;  %v323_v47 = vld [vmem:[%s944_s3 + $0x20] sm:$0xff] }
 0x22a   :  { %v209_v52 = vrot.slane %v208_v49, 2  ;;  %v204_v48 = vrot.slane %v203_v50, 1 }
 0x22c   :  { %v210_v26 = vadd.f32 %v209_v52, %v208_v49  ;;  %v205_v54 = vadd.f32 %v204_v48, %v203_v50  ;;  %v324_v49 = vld [vmem:[%s944_s3 + $0x28] sm:$0xff]  ;;  %v325_v52 = vld [vmem:[%s944_s3 + $0x30] sm:$0xff]  ;;  %v326_v48 = vld [vmem:[%s944_s3 + $0x38] sm:$0xff] }
 0x22d   :  { %v329_v50 = vpack.c.bf16 %v324_v49, %v323_v47  ;;  %v330_v53 = vpack.c.bf16 %v326_v48, %v325_v52 }
 0x22e   :  { %v211_v55 = vrot.slane %v210_v26, 1  ;;  %v231_v43 = vmul.f32 %v221_v56, %v205_v54 }
 0x22f   :  { %593 = vmatpush3.bf16.msra.mxu1 %v329_v50 }
 0x230   :  { %v212_v57 = vadd.f32 %v211_v55, %v210_v26  ;;  %v261_v59 = vpack.c.bf16 %v231_v43, %v231_v43  ;;  %594 = vmatprep.subr.bf16.mxu1 %v699_v2  ;;  %v253_v26 = vsel %vm52_vm0, %v752_v0, 0.0 }
 0x231   :  { %v254_v54 = vrot.slane %v253_v26, 4 }
 0x232   :  { %v232_v58 = vmul.f32 %v230_v51, %v212_v57  ;;  %v265_v4 = vunpack.c.l.b16 %v261_v59 }
 0x233   :  { %595 = vmatpush3.bf16.msra.mxu1 %v330_v53  ;;  %v255_v55 = vadd.f32 %v254_v54, %v253_v26 }
 0x234   :  { %v262_v60 = vpack.c.bf16 %v232_v58, %v232_v58  ;;  %608 = vmatprep.subr.bf16.mxu1 %v699_v2 }
 0x235   :  { %v256_v56 = vrot.slane %v255_v55, 2 }
 0x236   :  { %v266_v61 = vunpack.c.l.b16 %v262_v60 }
 0x237   :  { %v257_v51 = vadd.f32 %v256_v56, %v255_v55 }
 0x238   :  { %v267_v6 = vrot.slane %v266_v61, 7 }
 0x239   :  { %v258_v57 = vrot.slane %v257_v51, 1 }
 0x23a   :  { %v269_v7 = vsel %vm268_vm8, %v267_v6, %v265_v4 }
 0x23b   :  { %v270_v11 = vpack.c.b16 %v269_v7, %v269_v7  ;;  %v259_v43 = vadd.f32 %v258_v57, %v257_v51  ;;  %v444_v7 = vpack.c.bf16 %v437_v63, %v436_v62 }
 0x23d   :  { %589 = vmatmul.mubr.msk.bf16.vlgmr.msra.gmra.mrb[4].mxu0 %vm124_vm3, %v270_v11  ;;  %v260_v58 = vmul.f32 0.125, %v259_v43  ;;  %v438_v11 = vld [vmem:[%s946_s5 + $0x10] sm:$0xff] }
 0x23e   :  { %601 = vmatpush3.bf16.msra.mxu0 %v327_v10  ;;  %604 = vmatprep.mubr.msk.bf16.mxu0 %vm700_vm1, %v699_v2  ;;  %v445_v13 = vpack.c.bf16 %v439_v12, %v438_v11 }
 0x23f   :  { %602 = vmatprep.subr.bf16.mxu0 %v699_v2 }
 0x242   :  { %603 = vmatpush3.bf16.msra.mxu0 %v328_v14 }
 0x246   :  { %v194_v16 = vpop.xlane.xlu0 %193 }
 0x247   :  { %v196_v17 = vmul.f32 0.125, %v194_v16 }
 0x249   :  { %v234_v18 = vadd.f32 1.0, %v196_v17  ;;  %v523_v25 = vrot.slane %v196_v17, %v518_v19 }
 0x24b   :  { %v236_v20 = vmul.f32 %v234_v18, %v782_v9  ;;  %v191_v21 = vpop.xlane.xlu1 %190  ;;  %v440_v18 = vld [vmem:[%s946_s5 + $0x20] sm:$0xff] }
 0x24c   :  { %v195_v22 = vmul.f32 0.125, %v191_v21  ;;  %v442_v21 = vld [vmem:[%s946_s5 + $0x30] sm:$0xff] }
 0x24d   :  { %v244_v23 = vsel %vm52_vm0, %v236_v20, 0.0 }
 0x24e   :  { %v245_v24 = vrot.slane %v244_v23, 4  ;;  %v233_v27 = vadd.f32 1.0, %v195_v22  ;;  %v519_v28 = vrot.slane %v195_v22, %v518_v19  ;;  %v441_v19 = vld [vmem:[%s946_s5 + $0x28] sm:$0xff]  ;;  %v443_v22 = vld [vmem:[%s946_s5 + $0x38] sm:$0xff] }
 0x24f   :  { %v446_v20 = vpack.c.bf16 %v441_v19, %v440_v18 }
 0x250   :  { %v246_v29 = vadd.f32 %v245_v24, %v244_v23  ;;  %v235_v30 = vmul.f32 %v233_v27, %v777_v8  ;;  %v524_v1 = vsel %vm268_vm8, %v523_v25, %v519_v28  ;;  %v447_v23 = vpack.c.bf16 %v443_v22, %v442_v21  ;;  %v561_v25 = vld [vmem:[%s945_s4] ss:$0 sm:$0xff]  ;;  %s702_s4 = smov [#allocation4]  }
 0x251   :  { %527 = vst.msk [vmem:[#allocation4] sm:$0x3] %vm526_vm9, %v524_v1  ;;  %s544_s5 = sshll.u32 %s702_s4, 4  ;;  %s545_s5 = int_to_ptr.vmem [resolvable:$true] %s544_s5 }
 0x252   :  { %v247_v31 = vrot.slane %v246_v29, 2  ;;  %v237_v5 = vsel %vm52_vm0, %v235_v30, 0.0  ;;  %p656_p1 = scmp.lt.s32.totalorder %s545_s5, %s545_s5 }
 0x253   :  { %v238_v32 = vrot.slane %v237_v5, 4 }
 0x254   :  { %v248_v9 = vadd.f32 %v247_v31, %v246_v29 }
 0x255   :  { %v239_v33 = vadd.f32 %v238_v32, %v237_v5  ;;  %v562_v5 = vld [vmem:[%s947_s6] ss:$0 sm:$0xff]  ;;  %s651_s6 = scalar_lea.vmem %s545_s5, 32 }
 0x256   :  { %v249_v34 = vrot.slane %v248_v9, 1  ;;  %p652_p0 = scmp.ne.s32.totalorder %s545_s5, %s651_s6  ;;  %p657_p2 = scmp.lt.s32.totalorder %s651_s6, %s651_s6 }
 0x257   :  { %v240_v35 = vrot.slane %v239_v33, 2 }
 0x258   :  { %v250_v36 = vadd.f32 %v249_v34, %v248_v9  ;;  %p658_p3 = por %p657_p2, %p656_p1 }
 0x259   :  { %v241_v37 = vadd.f32 %v240_v35, %v239_v33 }
 0x25a   :  { %v252_v38 = vmul.f32 0.125, %v250_v36  ;;  %p659_p4 = pnand %p658_p3, %p652_p0 }
 0x25b   :  { %v242_v39 = vrot.slane %v241_v37, 1 }
 0x25c   :  { %v332_v3 = vpack.c.bf16 %v252_v38, %v252_v38 }
 0x25d   :  { %v243_v40 = vadd.f32 %v242_v39, %v241_v37 }
 0x25e   :  { %v380_v8 = vunpack.c.l.b16 %v332_v3 }
 0x25f   :  { %v251_v41 = vmul.f32 0.125, %v243_v40 }
 0x261   :  { %v331_v42 = vpack.c.bf16 %v251_v41, %v251_v41 }
 0x263   :  { %v379_v44 = vunpack.c.l.b16 %v331_v42 }
 0x265   :  { %v381_v45 = vsel %vm268_vm8, %v380_v8, %v379_v44 }
 0x266   :  { %v382_v46 = vpack.c.b16 %v381_v45, %v381_v45 }
 0x268   :  { %605 = vmatmul.mubr.msk.bf16.vlgmr.msra.gmra.mrb[8].mxu0 %vm52_vm0, %v382_v46 }
 0x310   :  { %v311_v59 = vpop.f32.mrb[4].mxu0 }
 0x311   :  { %v317_v60 = vmul.f32 0.125, %v311_v59  ;;  %v590_v61 = vpop.f32.mrb[5].mxu0 }
 0x312   :  { %v314_v4 = vpop.f32.mrb[6].mxu0 }
 0x313   :  { %v318_v0 = vadd.f32 %v317_v60, %v260_v58  ;;  %v591_v6 = vpop.f32.mrb[7].mxu0 }
 0x315   :  { %v333_v10 = vpack.c.bf16 %v318_v0, %v318_v0 }
 0x317   :  { %597 = vmatmul.mubr.msk.bf16.vlgmr.msra.gmra.mrb[0].mxu1 %vm52_vm0, %v333_v10 }
 0x318   :  { %609 = vmatpush3.bf16.msra.mxu1 %v444_v7  ;;  %616 = vmatprep.mubr.msk.bf16.mxu1 %vm700_vm1, %v699_v2 }
 0x319   :  { %610 = vmatprep.subr.bf16.mxu1 %v699_v2 }
 0x31c   :  { %611 = vmatpush3.bf16.msra.mxu1 %v445_v13 }
 0x31d   :  { %612 = vmatprep.subr.bf16.mxu1 %v699_v2 }
 0x320   :  { %613 = vmatpush3.bf16.msra.mxu1 %v446_v20 }
 0x321   :  { %614 = vmatprep.subr.bf16.mxu1 %v699_v2 }
 0x324   :  { %615 = vmatpush3.bf16.msra.mxu1 %v447_v23 }
 0x33b   :  { %v420_v14 = vpop.f32.mrb[8].mxu0 }
 0x33c   :  { %v606_v15 = vpop.f32.mrb[9].mxu0 }
 0x33d   :  { %v423_v16 = vpop.f32.mrb[10].mxu0 }
 0x33e   :  { %v607_v17 = vpop.f32.mrb[11].mxu0 }
 0x3ea   :  { %v371_v24 = vpop.f32.mrb[0].mxu1 }
 0x3eb   :  { %v421_v27 = vadd.f32 %v420_v14, %v371_v24  ;;  %v598_v28 = vpop.f32.mrb[1].mxu1 }
 0x3ec   :  { %v374_v29 = vpop.f32.mrb[2].mxu1 }
 0x3ed   :  { %v433_v30 = vadd.f32 %v561_v25, %v421_v27  ;;  %v599_v2 = vpop.f32.mrb[3].mxu1 }
 0x3ef   :  { %v434_v1 = vmax.f32 %v433_v30, 0.0 }
 0x3f1   :  { %v435_v31 = vpack.c.bf16 %v434_v1, %v434_v1 }
 0x3f3   :  { %617 = vmatmul.mubr.msk.bf16.vlgmr.msra.gmra.mrb[4].mxu1 %vm455_vm10, %v435_v31 }
 0x4c6   :  { %v493_v32 = vpop.f32.mrb[4].mxu1 }
 0x4c7   :  { %v494_v9 = vadd.f32 %v562_v5, %v493_v32  ;;  %v618_v33 = vpop.f32.mrb[5].mxu1 }
 0x4c8   :  { %v496_v34 = vpop.f32.mrb[6].mxu1 }
 0x4c9   :  { %v619_v35 = vpop.f32.mrb[7].mxu1  ;;  %v500_v36 = vsel %vm499_vm11, %v494_v9, -inf }
 0x4ca   :  { %501 = vmax.xlane.f32.xlu1 %v500_v36 }
 0x557   :  { %v502_v37 = vpop.xlane.xlu1 %501 }
 0x558   :  { %v503_v38 = vsub.f32 %v494_v9, %v502_v37 }
 0x55a   :  { %v504_v39 = vmul.f32 1.442695, %v503_v38 }
 0x55c   :  { %647 = vpow2.f32 %v504_v39 }
 0x566   :  { %v648_v40 = vpop.eup %647 }
 0x567   :  { %v506_v3 = vsel %vm499_vm11, %v648_v40, 0.0 }
 0x568   :  { %507 = vadd.xlane.f32.xlu1 %v506_v3 }
 0x569   :  { %662 = shalt.err (!%p659_p4)
}
 0x56a   :  { %s663_s24 = scalar_lea.hbm %s949_s8, 32 }
 0x56b   :  { %p664_p5 = scmp.ne.s32.totalorder %s949_s8, %s663_s24  ;;  %p667_p6 = scmp.lt.u32.totalorder %s663_s24, %s949_s8 }
 0x56d   :  { %p669_p7 = pnand %p667_p6, %p664_p5 }
 0x56f   :  { %672 = shalt.err (!%p669_p7)
}
 0x570   :  { %547 = dma.vmem_to_hbm [thread:$0]  %s545_s5, 32, %s949_s8, [#allocation5]  }
 0x571   :  { %s703_s29 = smov [#allocation2]  }
 0x572   :  { %s534_s30 = sshll.u32 %s703_s29, 4  ;;  %s535_s30 = int_to_ptr.vmem [resolvable:$true] %s534_s30 }
 0x573   :  { %s673_s9 = scalar_lea.vmem %s535_s30, 32  ;;  %p678_p9 = scmp.lt.s32.totalorder %s535_s30, %s535_s30 }
 0x574   :  { %p674_p8 = scmp.ne.s32.totalorder %s535_s30, %s673_s9  ;;  %p679_p10 = scmp.lt.s32.totalorder %s673_s9, %s673_s9 }
 0x576   :  { %p680_p11 = por %p679_p10, %p678_p9 }
 0x578   :  { %p681_p12 = pnand %p680_p11, %p674_p8 }
 0x5f5   :  { %v508_v41 = vpop.xlane.xlu1 %507 }
 0x5f6   :  { %649 = vrcp.f32 %v508_v41 }
 0x600   :  { %v650_v42 = vpop.eup %649 }
 0x601   :  { %v510_v8 = vmul.f32 %v650_v42, %v648_v40 }
 0x603   :  { %511 = vst.msk [vmem:[#allocation2] sm:$0x3] %vm499_vm11, %v510_v8 }
 0x604   :  { %684 = shalt.err (!%p681_p12)
}
 0x605   :  { %s685_s8 = scalar_lea.hbm %s948_s7, 32 }
 0x606   :  { %p686_p13 = scmp.ne.s32.totalorder %s948_s7, %s685_s8  ;;  %p689_p0 = scmp.lt.u32.totalorder %s685_s8, %s948_s7 }
 0x608   :  { %p691_p1 = pnand %p689_p0, %p686_p13 }
 0x60a   :  { %694 = shalt.err (!%p691_p1)
}
 0x60b   :  { %537 = dma.vmem_to_hbm [thread:$0]  %s535_s30, 32, %s948_s7, [#allocation3]  }
 0x60c   :  { %695 = dma.done.wait [#allocation3], 32  }
 0x60d   :  { %696 = vsyncadd [#allocation3], 4294967264 }
 0x60e   :  { %697 = dma.done.wait [#allocation5], 32  }
 0x60f   :  { %698 = vsyncadd [#allocation5], 4294967264 }
 0x610   :  { %554 = vsyncpa [#allocation3], 1 }
 0x611   :  { %555 = vsyncpa [#allocation5], 1 }

</bundles_post_ra>
